<compile_context>
chip_gen: v6e
topology: v6e:2x2x1
jax: 0.10.0
libtpu: 0.0.40
codegen_flags: <defaults>
</compile_context>

<pallas_src>
import jax
import jax.numpy as jnp
from jax.experimental import pallas as pl
from jax.experimental.pallas import tpu as pltpu


def _round_up(n: int, m: int) -> int:
    return ((n + m - 1) // m) * m


def _cdiv(a: int, b: int) -> int:
    return -(-a // b)


def mlp_kernel(x_ref, w1_ref, b1_ref, w2_ref, b2_ref, o_ref):
    # x arrives f32; cast to bf16 on the VPU (hidden under MXU cycles) instead of
    # paying a separate wrapper pad+convert pass over HBM.
    x = x_ref[...].astype(jnp.bfloat16)                                 # (TB, In) bf16
    h = jnp.dot(x, w1_ref[...], preferred_element_type=jnp.float32)     # (TB, H_p) f32
    h = jnp.maximum(h + b1_ref[...], 0.0)                               # bias + ReLU in f32
    y = jnp.dot(h.astype(jnp.bfloat16), w2_ref[...],
                preferred_element_type=jnp.float32)                     # (TB, C_p) f32
    o_ref[...] = (y + b2_ref[...]).astype(o_ref.dtype)


def prepare_params(w1, b1, w2, b2, *, lane_multiple=128):
    """Pad / cast the weights ONCE (model init); reuse the result every forward.

    hidden / num_classes are zero-padded to multiples of `lane_multiple` (128) so
    both matmuls and the output store are lane-dense (no masked vst.msk partial
    stores).  input_size is left at full extent, so x never needs feature-dim
    padding per call.
    NOTE: for production sizes prefer input/hidden multiples of 256 on v6e/v7x
    (256-wide MXU); 128 alignment is already optimal on v5e.
    """
    In, H = w1.shape
    H2, C = w2.shape
    assert H2 == H and b1.shape == (H,) and b2.shape == (C,)
    H_p = _round_up(H, lane_multiple)
    C_p = _round_up(C, lane_multiple)
    w1_p = jnp.pad(w1, ((0, 0), (0, H_p - H))).astype(jnp.bfloat16)       # (In, H_p)
    w2_p = jnp.pad(w2, ((0, H_p - H), (0, C_p - C))).astype(jnp.bfloat16)  # (H_p, C_p)
    b1_p = jnp.pad(b1, (0, H_p - H)).reshape(1, H_p).astype(jnp.float32)
    b2_p = jnp.pad(b2, (0, C_p - C)).reshape(1, C_p).astype(jnp.float32)
    return (w1_p, b1_p, w2_p, b2_p), (In, H, C)


def neural_net2_forward(x, params, dims, *, batch_tile=512, out_dtype=jnp.float32):
    """x: (B, input_size) f32.  params/dims from prepare_params().
       Returns (B, num_classes) in out_dtype (f32 by default; bf16 on v5e if the
       consumer tolerates it)."""
    w1_p, b1_p, w2_p, b2_p = params
    In, H, C = dims
    B, In_x = x.shape
    assert In_x == In
    H_p = w1_p.shape[1]
    C_p = w2_p.shape[1]

    # ---- Batch tiling --------------------------------------------------------
    # >=2 tiles for medium batches so the "parallel" grid axis can shard across
    # v7x's two TensorCores; large batches stream `batch_tile`-row tiles (bigger
    # tiles amortize per-grid-step pipeline overhead).
    batch_tile = _round_up(batch_tile, 16)
    if B <= 2 * batch_tile:
        TB = min(batch_tile, _round_up(_cdiv(B, 2), 16))
    else:
        TB = batch_tile
    B_p = _round_up(B, TB)
    n_tiles = B_p // TB

    # Only the batch dim of x is padded; features use a full-extent block.
    x_p = x if B_p == B else jnp.pad(x, ((0, B_p - B), (0, 0)))

    out_itemsize = jnp.dtype(out_dtype).itemsize

    # ---- VMEM budget ---------------------------------------------------------
    resident = (w1_p.size + w2_p.size) * 2 + (b1_p.size + b2_p.size) * 4
    streamed = 2 * TB * In * 4 + 2 * TB * C_p * out_itemsize     # double-buffered x / out blocks
    scratch = TB * (In * 2 + H_p * 6 + C_p * 4)                  # x bf16, h f32+bf16, y f32
    vmem_limit = int(max(32 << 20, min(56 << 20, 2 * (resident + streamed + scratch))))
    # NOTE: if `resident` alone approaches ~48 MiB (very large hidden sizes on
    # v7x's 64 MiB VMEM), switch to a K/N-tiled grid with an f32 accumulator
    # scratch (pl.when init/finalize) instead of keeping W1/W2 fully resident,
    # and/or store the weights in fp8 on v7x.

    flops = 2 * B_p * In * H_p + 2 * B_p * H_p * C_p
    bytes_accessed = x_p.size * 4 + resident + B_p * C_p * out_itemsize

    def weight_spec(shape):
        # Constant index_map: block never changes across the batch grid, so it is
        # DMA'd once and held VMEM-resident; Buffered(1) avoids pointless
        # double-buffering (halves resident-weight VMEM footprint).
        return pl.BlockSpec(shape, lambda i: (0, 0), pipeline_mode=pl.Buffered(1))

    out_padded = pl.pallas_call(
        mlp_kernel,
        out_shape=jax.ShapeDtypeStruct((B_p, C_p), out_dtype),
        grid=(n_tiles,),
        in_specs=[
            # Only the activations advance with the batch grid index.
            pl.BlockSpec((TB, In), lambda i: (i, 0)),
            weight_spec((In, H_p)),
            weight_spec((1, H_p)),
            weight_spec((H_p, C_p)),
            weight_spec((1, C_p)),
        ],
        out_specs=pl.BlockSpec((TB, C_p), lambda i: (i, 0)),
        compiler_params=pltpu.CompilerParams(
            # Batch tiles are independent -> "parallel": shards across both TCs
            # on v7x, harmless on v5e/v6e.
            dimension_semantics=("parallel",),
            vmem_limit_bytes=vmem_limit,
        ),
        cost_estimate=pl.CostEstimate(
            flops=flops, transcendentals=0, bytes_accessed=int(bytes_accessed)),
    )(x_p, w1_p, b1_p, w2_p, b2_p)

    if B_p == B and C_p == C:
        return out_padded          # skip the extra HBM pass when already aligned
    return out_padded[:B, :C]


def reference_forward_f32(x, w1, b1, w2, b2):
    h = jnp.maximum(x @ w1 + b1, 0.0)
    return h @ w2 + b2


def reference_forward_bf16(x, w1, b1, w2, b2):
    # Mirrors the kernel's numerics: bf16 MXU operands, f32 accumulation/epilogue.
    h = jnp.dot(x.astype(jnp.bfloat16), w1.astype(jnp.bfloat16),
                preferred_element_type=jnp.float32) + b1
    h = jnp.maximum(h, 0.0)
    y = jnp.dot(h.astype(jnp.bfloat16), w2.astype(jnp.bfloat16),
                preferred_element_type=jnp.float32) + b2
    return y


if __name__ == "__main__":
    # Small shapes consistent with NeuralNet2(input_size, hidden_size, num_classes)
    batch, input_size, hidden_size, num_classes = 8, 32, 32, 16

    key = jax.random.PRNGKey(0)
    kx, kw1, kb1, kw2, kb2 = jax.random.split(key, 5)

    x = jax.random.normal(kx, (batch, input_size), dtype=jnp.float32)

    # PyTorch nn.Linear default init: U(-1/sqrt(fan_in), 1/sqrt(fan_in))
    bound1 = 1.0 / jnp.sqrt(jnp.float32(input_size))
    w1 = jax.random.uniform(kw1, (input_size, hidden_size), jnp.float32, -bound1, bound1)
    b1 = jax.random.uniform(kb1, (hidden_size,), jnp.float32, -bound1, bound1)

    bound2 = 1.0 / jnp.sqrt(jnp.float32(hidden_size))
    w2 = jax.random.uniform(kw2, (hidden_size, num_classes), jnp.float32, -bound2, bound2)
    b2 = jax.random.uniform(kb2, (num_classes,), jnp.float32, -bound2, bound2)

    # Pad/cast weights ONCE (model init), then reuse across forwards.
    params, dims = prepare_params(w1, b1, w2, b2)

    out = neural_net2_forward(x, params, dims)
    out = jax.block_until_ready(out)
    assert out.shape == (batch, num_classes)

    # Tight check vs. a reference with the same bf16-operand / f32-accum numerics.
    ref_bf16 = reference_forward_bf16(x, w1, b1, w2, b2)
    assert jnp.allclose(out, ref_bf16, atol=2e-3, rtol=2e-3)

    # Relaxed check vs. the pure-f32 PyTorch-equivalent forward.
    ref_f32 = reference_forward_f32(x, w1, b1, w2, b2)
    assert jnp.allclose(out, ref_f32, atol=5e-2, rtol=5e-2)

    print("KERNEL_OK")
</pallas_src>

<mosaic_0001>
module attributes {stable_mosaic.version = 11 : i64} {
  func.func @mlp_kernel(%arg0: i32, %arg1: memref<16x32xf32, #tpu.memory_space<vmem>>, %arg2: memref<32x128xbf16, #tpu.memory_space<vmem>>, %arg3: memref<1x128xf32, #tpu.memory_space<vmem>>, %arg4: memref<128x128xbf16, #tpu.memory_space<vmem>>, %arg5: memref<1x128xf32, #tpu.memory_space<vmem>>, %arg6: memref<16x128xf32, #tpu.memory_space<vmem>>) attributes {dimension_semantics = [#tpu.dimension_semantics<parallel>], iteration_bounds = array<i64: 1>, scalar_prefetch = 0 : i64, scratch_operands = 0 : i64, tpu.core_type = #tpu.core_type<tc>, window_params = [{transform_indices = @transform_0, window_bounds = array<i64: 16, 32>}, {pipeline_mode = #tpu.pipeline_mode<synchronous>, transform_indices = @transform_1, window_bounds = array<i64: 32, 128>}, {pipeline_mode = #tpu.pipeline_mode<synchronous>, transform_indices = @transform_2, window_bounds = array<i64: 1, 128>}, {pipeline_mode = #tpu.pipeline_mode<synchronous>, transform_indices = @transform_3, window_bounds = array<i64: 128, 128>}, {pipeline_mode = #tpu.pipeline_mode<synchronous>, transform_indices = @transform_4, window_bounds = array<i64: 1, 128>}, {transform_indices = @transform_5, window_bounds = array<i64: 16, 128>}]} {
    %c0 = arith.constant 0 : index
    %c0_0 = arith.constant 0 : index
    %0 = vector.load %arg1[%c0, %c0_0] : memref<16x32xf32, #tpu.memory_space<vmem>>, vector<16x32xf32>
    %1 = arith.truncf %0 : vector<16x32xf32> to vector<16x32xbf16>
    %c0_1 = arith.constant 0 : index
    %c0_2 = arith.constant 0 : index
    %2 = vector.load %arg2[%c0_1, %c0_2] : memref<32x128xbf16, #tpu.memory_space<vmem>>, vector<32x128xbf16>
    %cst = arith.constant dense<0.000000e+00> : vector<16x128xf32>
    %3 = tpu.matmul %1, %2, %cst {dimension_numbers = #tpu.dot_dimension_numbers<[1], [0], [0], [1], [0, 0, 1, 1], [], []>} : vector<16x32xbf16>, vector<32x128xbf16>, vector<16x128xf32> -> vector<16x128xf32>
    %c0_3 = arith.constant 0 : index
    %c0_4 = arith.constant 0 : index
    %4 = vector.load %arg3[%c0_3, %c0_4] : memref<1x128xf32, #tpu.memory_space<vmem>>, vector<1x128xf32>
    %5 = vector.broadcast %4 : vector<1x128xf32> to vector<16x128xf32>
    %6 = arith.addf %3, %5 : vector<16x128xf32>
    %cst_5 = arith.constant 0.000000e+00 : f32
    %7 = vector.broadcast %cst_5 : f32 to vector<16x128xf32>
    %8 = arith.maximumf %6, %7 : vector<16x128xf32>
    %9 = arith.truncf %8 : vector<16x128xf32> to vector<16x128xbf16>
    %c0_6 = arith.constant 0 : index
    %c0_7 = arith.constant 0 : index
    %10 = vector.load %arg4[%c0_6, %c0_7] : memref<128x128xbf16, #tpu.memory_space<vmem>>, vector<128x128xbf16>
    %cst_8 = arith.constant dense<0.000000e+00> : vector<16x128xf32>
    %11 = tpu.matmul %9, %10, %cst_8 {dimension_numbers = #tpu.dot_dimension_numbers<[1], [0], [0], [1], [0, 0, 1, 1], [], []>} : vector<16x128xbf16>, vector<128x128xbf16>, vector<16x128xf32> -> vector<16x128xf32>
    %c0_9 = arith.constant 0 : index
    %c0_10 = arith.constant 0 : index
    %12 = vector.load %arg5[%c0_9, %c0_10] : memref<1x128xf32, #tpu.memory_space<vmem>>, vector<1x128xf32>
    %13 = vector.broadcast %12 : vector<1x128xf32> to vector<16x128xf32>
    %14 = arith.addf %11, %13 : vector<16x128xf32>
    %c0_11 = arith.constant 0 : index
    %c0_12 = arith.constant 0 : index
    %15 = vector.load %arg6[%c0_11, %c0_12] : memref<16x128xf32, #tpu.memory_space<vmem>>, vector<16x128xf32>
    tpu.vector_store %arg6[%c0_11, %c0_12], %14 {strides = array<i32>} : memref<16x128xf32, #tpu.memory_space<vmem>>, vector<16x128xf32>,
    return
  }
  func.func @transform_0(%arg0: i32) -> (i32, i32) {
    %c0_i32 = arith.constant 0 : i32
    %c0_i32_0 = arith.constant 0 : i32
    return %arg0, %c0_i32 : i32, i32
  }
  func.func @transform_1(%arg0: i32) -> (i32, i32) {
    %c0_i32 = arith.constant 0 : i32
    %c0_i32_0 = arith.constant 0 : i32
    %c0_i32_1 = arith.constant 0 : i32
    return %c0_i32, %c0_i32_0 : i32, i32
  }
  func.func @transform_2(%arg0: i32) -> (i32, i32) {
    %c0_i32 = arith.constant 0 : i32
    %c0_i32_0 = arith.constant 0 : i32
    %c0_i32_1 = arith.constant 0 : i32
    return %c0_i32, %c0_i32_0 : i32, i32
  }
  func.func @transform_3(%arg0: i32) -> (i32, i32) {
    %c0_i32 = arith.constant 0 : i32
    %c0_i32_0 = arith.constant 0 : i32
    %c0_i32_1 = arith.constant 0 : i32
    return %c0_i32, %c0_i32_0 : i32, i32
  }
  func.func @transform_4(%arg0: i32) -> (i32, i32) {
    %c0_i32 = arith.constant 0 : i32
    %c0_i32_0 = arith.constant 0 : i32
    %c0_i32_1 = arith.constant 0 : i32
    return %c0_i32, %c0_i32_0 : i32, i32
  }
  func.func @transform_5(%arg0: i32) -> (i32, i32) {
    %c0_i32 = arith.constant 0 : i32
    %c0_i32_0 = arith.constant 0 : i32
    return %arg0, %c0_i32 : i32, i32
  }
}

</mosaic_0001>

<bundles_post_ra>
// kernel: tpu_custom_call.1
= control target key start
LH: loop header
LB: loop body
LE: loop exit
PB: predicated region body
PF: predicated region fallthrough
CT: control target
= control target key end

     0   :  { %10 = vsyncpa [#allocation3], 0  ;;  %s492_s0 = inlined_call_operand.hbm [shape: f32[16,32], index: 0, kind: input, shape index: {}]   ;;  %s493_s1 = inlined_call_operand.hbm [shape: bf16[32,128], index: 1, kind: input, shape index: {}]   ;;  %s494_s2 = inlined_call_operand.vmem [shape: f32[1,128], index: 2, kind: input, shape index: {}]   ;;  %s495_s3 = inlined_call_operand.hbm [shape: bf16[128,128], index: 3, kind: input, shape index: {}]   ;;  %s496_s4 = inlined_call_operand.vmem [shape: f32[1,128], index: 4, kind: input, shape index: {}]   ;;  %s497_s5 = inlined_call_operand.hbm [shape: f32[16,128], index: 5, kind: output, shape index: {}]  }
   0x1   :  { %11 = vsyncpa [#allocation6], 0 }
   0x2   :  { %12 = vsyncpa [#allocation4], 0  ;;  %s428_s18 = smov [#allocation5]  }
   0x3   :  { %s30_s19 = sshll.u32 %s428_s18, 4  ;;  %s31_s19 = int_to_ptr.vmem [resolvable:$true] %s30_s19 }
   0x4   :  { %s350_s20 = scalar_lea.vmem %s31_s19, 256  ;;  %p355_p1 = scmp.lt.s32.totalorder %s31_s19, %s31_s19 }
   0x5   :  { %p351_p0 = scmp.ne.s32.totalorder %s31_s19, %s350_s20  ;;  %p356_p2 = scmp.lt.s32.totalorder %s350_s20, %s350_s20 }
   0x7   :  { %p357_p3 = por %p356_p2, %p355_p1 }
   0x9   :  { %p358_p4 = pnand %p357_p3, %p351_p0 }
   0xb   :  { %361 = shalt.err (!%p358_p4)
}
   0xc   :  { %s429_s21 = smov 64   ;;  %s430_s22 = smov 4  }
   0xd   :  { %36 = dma.hbm_to_vmem [thread:$0]  %s493_s1, 256, %s31_s19, [#allocation6], %s429_s21, %s429_s21, %s430_s22  }
   0xe   :  { %s431_s25 = smov [#allocation2]  }
   0xf   :  { %s18_s26 = sshll.u32 %s431_s25, 4  ;;  %s19_s26 = int_to_ptr.vmem [resolvable:$true] %s18_s26 }
  0x10   :  { %s370_s27 = scalar_lea.vmem %s19_s26, 256  ;;  %p375_p6 = scmp.lt.s32.totalorder %s19_s26, %s19_s26 }
  0x11   :  { %p371_p5 = scmp.ne.s32.totalorder %s19_s26, %s370_s27  ;;  %p376_p7 = scmp.lt.s32.totalorder %s370_s27, %s370_s27 }
  0x13   :  { %p377_p8 = por %p376_p7, %p375_p6 }
  0x15   :  { %p378_p9 = pnand %p377_p8, %p371_p5 }
  0x17   :  { %381 = shalt.err (!%p378_p9)
}
  0x18   :  { %s432_s28 = smov 128   ;;  %s433_s29 = smov 8  }
  0x19   :  { %24 = dma.hbm_to_vmem [thread:$0]  %s492_s0, 256, %s19_s26, [#allocation3], %s432_s28, %s432_s28, %s433_s29  }
  0x1a   :  { %s434_s1 = smov [#allocation7]  }
  0x1b   :  { %s44_s7 = sshll.u32 %s434_s1, 4  ;;  %s45_s7 = int_to_ptr.vmem [resolvable:$true] %s44_s7 }
  0x1c   :  { %s390_s8 = scalar_lea.vmem %s45_s7, 1024  ;;  %p395_p11 = scmp.lt.s32.totalorder %s45_s7, %s45_s7 }
  0x1d   :  { %p391_p10 = scmp.ne.s32.totalorder %s45_s7, %s390_s8  ;;  %p396_p12 = scmp.lt.s32.totalorder %s390_s8, %s390_s8 }
  0x1f   :  { %p397_p13 = por %p396_p12, %p395_p11 }
  0x21   :  { %p398_p0 = pnand %p397_p13, %p391_p10 }
  0x23   :  { %401 = shalt.err (!%p398_p0)
}
  0x24   :  { %50 = dma.hbm_to_vmem [thread:$0]  %s495_s3, 1024, %s45_s7, [#allocation6], %s429_s21, %s429_s21, %s430_s22  }
  0x25   :  { %422 = dma.done.wait [#allocation3], 256  }
  0x26   :  { %423 = vsyncadd [#allocation3], 4294967040 }
  0x27   :  { %424 = dma.done.wait [#allocation6], 1280  }
  0x28   :  { %425 = vsyncadd [#allocation6], 4294966016  ;;  %v435_v0 = vmov 0.0   ;;  %vm436_vm0 = vmmov 0   ;;  %v332_v1 = vld [vmem:[#allocation5 + $0x8] sm:$0xff]   ;;  %v333_v2 = vld [vmem:[#allocation5] sm:$0xff]  }
  0x29   :  { %294 = vmatprep.subr.bf16.mxu0 %v435_v0  ;;  %298 = vmatprep.mubr.msk.bf16.mxu0 %vm436_vm0, %v435_v0  ;;  %v63_v3 = vld [vmem:[#allocation2] sm:$0xff]  ;;  %v64_v4 = vld [vmem:[#allocation2 + $0x8] sm:$0xff]  ;;  %v334_v5 = vld [vmem:[#allocation7 + $0x38] sm:$0xff]   ;;  %vm89_vm1 = vcmask 261120   ;;  %s437_s13 = smov [#allocation8]  }
  0x2a   :  { %302 = vmatprep.subr.bf16.mxu1 %v435_v0  ;;  %318 = vmatprep.mubr.msk.bf16.mxu1 %vm436_vm0, %v435_v0  ;;  %v65_v6 = vpack.c.bf16 %v64_v4, %v63_v3  ;;  %v335_v7 = vld [vmem:[#allocation7 + $0x30] sm:$0xff]   ;;  %v336_v8 = vld [vmem:[#allocation7 + $0x28] sm:$0xff]   ;;  %v337_v9 = vld [vmem:[#allocation7 + $0x20] sm:$0xff]   ;;  %s256_s14 = sshll.u32 %s437_s13, 4  ;;  %s257_s14 = int_to_ptr.vmem [resolvable:$true] %s256_s14 }
  0x2b   :  { %295 = vmatpush3.bf16.msra.mxu0 %v332_v1  ;;  %303 = vmatpush3.bf16.msra.mxu1 %v334_v5  ;;  %v338_v10 = vld [vmem:[#allocation7 + $0x18] sm:$0xff]   ;;  %v339_v11 = vld [vmem:[#allocation7 + $0x10] sm:$0xff]   ;;  %v340_v12 = vld [vmem:[#allocation7 + $0x8] sm:$0xff]   ;;  %p407_p2 = scmp.lt.s32.totalorder %s257_s14, %s257_s14 }
  0x2c   :  { %296 = vmatprep.subr.bf16.mxu0 %v435_v0  ;;  %304 = vmatprep.subr.bf16.mxu1 %v435_v0  ;;  %v341_v13 = vld [vmem:[#allocation7] sm:$0xff]  }
  0x2d   :  { %v269_v14 = vld [vmem:[%s494_s2] ss:$0 sm:$0xff]  ;;  %s402_s2 = scalar_lea.vmem %s257_s14, 256 }
  0x2e   :  { %v273_v24 = vld [vmem:[%s496_s4] ss:$0 sm:$0xff]  ;;  %p403_p1 = scmp.ne.s32.totalorder %s257_s14, %s402_s2  ;;  %p408_p3 = scmp.lt.s32.totalorder %s402_s2, %s402_s2 }
  0x2f   :  { %297 = vmatpush3.bf16.msra.mxu0 %v333_v2  ;;  %305 = vmatpush3.bf16.msra.mxu1 %v335_v7 }
  0x30   :  { %306 = vmatprep.subr.bf16.mxu1 %v435_v0  ;;  %p409_p4 = por %p408_p3, %p407_p2 }
  0x32   :  { %299 = vmatmul.mubr.msk.bf16.vlgmr.msra.gmra.mxu0 %vm89_vm1, %v65_v6  ;;  %p410_p5 = pnand %p409_p4, %p403_p1 }
  0x33   :  { %307 = vmatpush3.bf16.msra.mxu1 %v336_v8 }
  0x34   :  { %308 = vmatprep.subr.bf16.mxu1 %v435_v0 }
  0x37   :  { %309 = vmatpush3.bf16.msra.mxu1 %v337_v9 }
  0x38   :  { %310 = vmatprep.subr.bf16.mxu1 %v435_v0 }
  0x3b   :  { %311 = vmatpush3.bf16.msra.mxu1 %v338_v10 }
  0x3c   :  { %312 = vmatprep.subr.bf16.mxu1 %v435_v0 }
  0x3f   :  { %313 = vmatpush3.bf16.msra.mxu1 %v339_v11 }
  0x40   :  { %314 = vmatprep.subr.bf16.mxu1 %v435_v0 }
  0x43   :  { %315 = vmatpush3.bf16.msra.mxu1 %v340_v12 }
  0x44   :  { %316 = vmatprep.subr.bf16.mxu1 %v435_v0 }
  0x47   :  { %317 = vmatpush3.bf16.msra.mxu1 %v341_v13 }
  0xf2   :  { %v127_v15 = vpop.f32.mrf.mxu0 }
  0xf3   :  { %v128_v17 = vadd.f32 %v269_v14, %v127_v15 }
  0xf4   :  { %v300_v16 = vpop.f32.mrf.mxu0 }
  0xf5   :  { %v134_v21 = vmax.f32 %v128_v17, 0.0 }
  0xf6   :  { %v130_v18 = vpop.f32.mrf.mxu0 }
  0xf7   :  { %v131_v19 = vadd.f32 %v269_v14, %v130_v18 }
  0xf8   :  { %v301_v20 = vpop.f32.mrf.mxu0 }
  0xf9   :  { %v135_v22 = vmax.f32 %v131_v19, 0.0 }
  0xfb   :  { %v136_v23 = vpack.c.bf16 %v135_v22, %v134_v21 }
  0xfd   :  { %319 = vmatmul.mubr.bf16.vlgmr.msra.gmra.mxu1 %v136_v23 }
 0x1bd   :  { %v242_v25 = vpop.f32.mrf.mxu1 }
 0x1be   :  { %v243_v26 = vadd.f32 %v273_v24, %v242_v25 }
 0x1bf   :  { %v320_v27 = vpop.f32.mrf.mxu1 }
 0x1c0   :  { %249 = vst [vmem:[#allocation8] sm:$0xff] %v243_v26 }
 0x1c1   :  { %v245_v28 = vpop.f32.mrf.mxu1 }
 0x1c2   :  { %v246_v29 = vadd.f32 %v273_v24, %v245_v28 }
 0x1c3   :  { %v321_v30 = vpop.f32.mrf.mxu1 }
 0x1c4   :  { %250 = vst [vmem:[#allocation8 + $0x8] sm:$0xff] %v246_v29 }
 0x1c5   :  { %413 = shalt.err (!%p410_p5)
}
 0x1c6   :  { %262 = dma.vmem_to_hbm [thread:$0]  %s257_s14, 256, %s497_s5, [#allocation4], %s432_s28, %s432_s28, %s433_s29  }
 0x1c7   :  { %426 = dma.done.wait [#allocation4], 256  }
 0x1c8   :  { %427 = vsyncadd [#allocation4], 4294967040 }
 0x1c9   :  { %266 = vsyncpa [#allocation3], 1 }
 0x1ca   :  { %267 = vsyncpa [#allocation6], 1 }
 0x1cb   :  { %268 = vsyncpa [#allocation4], 1 }

</bundles_post_ra>
